<compile_context>
chip_gen: v6e
topology: v6e:2x2x1
jax: 0.10.0
libtpu: 0.0.40
codegen_flags: <defaults>
</compile_context>

<pallas_src>
import functools

import jax
import jax.numpy as jnp
from jax import lax
from jax.experimental import pallas as pl
from jax.experimental.pallas import tpu as pltpu


# (kernel_size, stride) of pool2 .. pool5, as in the PyTorch module.
_POOLS = (((2, 2), (2, 2)), ((4, 4), (4, 4)), ((6, 6), (6, 6)), ((6, 8), (8, 8)))

# Fused pixel-space operator must fit (double-buffered) in VMEM.
_MAX_OPERATOR_BYTES = 12 * 1024 * 1024


def _bilinear_matrix(out_size, in_size):
    """(out_size, in_size) 1-D interpolation matrix matching PyTorch
    F.interpolate(mode='bilinear', align_corners=False) along one axis."""
    i = jnp.arange(out_size, dtype=jnp.float32)
    src = (i + 0.5) * (in_size / out_size) - 0.5
    src = jnp.clip(src, 0.0, float(in_size - 1))
    lo = jnp.floor(src).astype(jnp.int32)
    hi = jnp.minimum(lo + 1, in_size - 1)
    frac = src - lo.astype(jnp.float32)
    rows = jnp.arange(out_size)
    m = jnp.zeros((out_size, in_size), jnp.float32)
    m = m.at[rows, lo].add(1.0 - frac)
    m = m.at[rows, hi].add(frac)
    return m


def _fold_bn_into_1x1(conv_w, gamma, beta, mean, var, eps=1e-5):
    """Fold eval-mode BatchNorm followed by a bias-free 1x1 conv so that
    conv(BN(x))[o] == sum_c W_eff[o, c] * x[c] + b_eff[o].
    (The PyTorch module's Sequentials are (BN, Conv1x1), i.e. BN first.)"""
    s = gamma / jnp.sqrt(var + eps)                        # (Cin,)
    t = beta - mean * s                                    # (Cin,)
    w_eff = conv_w.astype(jnp.float32) * s[None, :]        # (Cout, Cin)
    b_eff = conv_w.astype(jnp.float32) @ t                 # (Cout,)
    return w_eff, b_eff


def _spp_kernel(x_ref,                 # (1, C, HW)   residual input, lane-dense
                s_ref,                 # (1, C, R)    concat. small (pooled+conv) maps
                op_ref,                # (R, HW)      fused interp operator (Params folded)
                w2_ref,                # (C, C)       folded BN2 + 1x1 conv weight (VMEM)
                b2_ref,                # (C, 1)       folded BN2 + 1x1 conv bias   (VMEM)
                out_ref):              # (1, C, HW)
    # All four branches' upsamples in one lane-dense MXU matmul.
    up = jnp.dot(s_ref[0], op_ref[...],
                 preferred_element_type=jnp.float32)               # (C, HW)
    # out = x + sum_k Params[k] * upsample_k(conv(pool_k(x_L)))
    acc = x_ref[0].astype(jnp.float32) + up                        # (C, HW)
    # conv_smoonth: folded BN + 1x1 conv (+ bias) + ReLU, one MXU matmul.
    y = jnp.dot(w2_ref[...], acc,
                preferred_element_type=jnp.float32) + b2_ref[...]  # (C, HW)
    out_ref[0] = jnp.maximum(y, 0.0).astype(out_ref.dtype)


def spp_block_forward(x_L, x, weights):
    """SPPblock.forward(x_L, x).  x_L: (N, Cin, HL, WL), x: (N, Cout, h, w), NCHW."""
    N, c_in, _, _ = x_L.shape
    Nx, c_out, h, w = x.shape
    assert Nx == N
    hw = h * w

    w1_eff, b1_eff = _fold_bn_into_1x1(weights["conv1_w"], weights["bn1_gamma"],
                                       weights["bn1_beta"], weights["bn1_mean"],
                                       weights["bn1_var"])
    w2_eff, b2_eff = _fold_bn_into_1x1(weights["conv2_w"], weights["bn2_gamma"],
                                       weights["bn2_beta"], weights["bn2_mean"],
                                       weights["bn2_var"])
    params = weights["params"].astype(jnp.float32)

    # ---- tiny preprocessing glue (pool + shared 1x1 conv on the pooled maps,
    # and construction of the grid-constant fused interpolation operator) ----
    small_list, op_list = [], []
    neg_inf = jnp.array(-jnp.inf, x_L.dtype)
    for k, ((kh, kw), (sh, sw)) in enumerate(_POOLS):
        # MaxPool2d (ceil_mode=False) == VALID reduce_window.
        p = lax.reduce_window(x_L, neg_inf, lax.max,
                              (1, 1, kh, kw), (1, 1, sh, sw), "VALID")
        hp, wp = p.shape[2], p.shape[3]
        # shared BN + 1x1 conv ("self.conv") on the small pooled map.
        s = jnp.einsum('oc,ncij->noij', w1_eff, p.astype(jnp.float32))
        s = s + b1_eff[None, :, None, None]                        # (N, C, Hp, Wp)
        small_list.append(s.reshape(N, c_out, hp * wp))
        # Separable bilinear factors -> fused pixel-space operator rows for
        # this branch:  op[(i,j), (y,x)] = Params[k] * uh[y,i] * uw[x,j].
        uh = _bilinear_matrix(h, hp)                               # (h, Hp)
        uw = _bilinear_matrix(w, wp)                               # (w, Wp)
        op = jnp.einsum('yi,xj->ijyx', uh, uw).reshape(hp * wp, hw)
        op_list.append(params[k] * op)

    s_cat = jnp.concatenate(small_list, axis=-1)                   # (N, C, R)
    op_cat = jnp.concatenate(op_list, axis=0)                      # (R, HW)
    r_total = op_cat.shape[0]
    assert r_total * hw * 4 <= _MAX_OPERATOR_BYTES, (
        "fused interp operator too large for VMEM; use the separable/tiled "
        "fallback for large spatial sizes")  # TODO(synk): implement fallback.

    # Lane-dense layouts: flatten pixels onto the lane axis (free reshapes).
    x_flat = x.reshape(N, c_out, hw)
    b2_col = b2_eff.reshape(c_out, 1)

    in_specs = [
        pl.BlockSpec((1, c_out, hw), lambda n: (n, 0, 0)),         # x (per batch)
        pl.BlockSpec((1, c_out, r_total), lambda n: (n, 0, 0)),    # small maps
        pl.BlockSpec((r_total, hw), lambda n: (0, 0)),             # operator (grid-constant)
        pl.BlockSpec((c_out, c_out), lambda n: (0, 0)),            # w2_eff   (grid-constant)
        pl.BlockSpec((c_out, 1), lambda n: (0, 0)),                # b2_eff   (grid-constant)
    ]
    out_specs = pl.BlockSpec((1, c_out, hw), lambda n: (n, 0, 0))

    # Advisory cost hint (grid-constant operands counted once) so XLA can
    # overlap the pooling / small-conv glue with the kernel.
    flops = 2 * N * c_out * hw * (r_total + c_out)
    bytes_accessed = 4 * (2 * N * c_out * hw + N * c_out * r_total
                          + r_total * hw + c_out * c_out + c_out)
    cost = pl.CostEstimate(flops=flops, transcendentals=0,
                           bytes_accessed=bytes_accessed)

    out_flat = pl.pallas_call(
        _spp_kernel,
        out_shape=jax.ShapeDtypeStruct((N, c_out, hw), x.dtype),
        grid=(N,),
        in_specs=in_specs,
        out_specs=out_specs,
        compiler_params=pltpu.CompilerParams(
            dimension_semantics=("parallel",)),
        cost_estimate=cost,
    )(x_flat, s_cat, op_cat, w2_eff, b2_col)

    return out_flat.reshape(N, c_out, h, w)


def _reference(x_L, x, weights):
    """Plain-JAX reference of the same (eval-mode, folded-BN) forward pass."""
    _, c_out, h, w = x.shape
    w1_eff, b1_eff = _fold_bn_into_1x1(weights["conv1_w"], weights["bn1_gamma"],
                                       weights["bn1_beta"], weights["bn1_mean"],
                                       weights["bn1_var"])
    w2_eff, b2_eff = _fold_bn_into_1x1(weights["conv2_w"], weights["bn2_gamma"],
                                       weights["bn2_beta"], weights["bn2_mean"],
                                       weights["bn2_var"])
    params = weights["params"].astype(jnp.float32)
    neg_inf = jnp.array(-jnp.inf, x_L.dtype)
    acc = x.astype(jnp.float32)
    for k, ((kh, kw), (sh, sw)) in enumerate(_POOLS):
        p = lax.reduce_window(x_L, neg_inf, lax.max,
                              (1, 1, kh, kw), (1, 1, sh, sw), "VALID")
        s = jnp.einsum('oc,ncij->noij', w1_eff, p.astype(jnp.float32))
        s = s + b1_eff[None, :, None, None]
        uh = _bilinear_matrix(h, p.shape[2])
        uw = _bilinear_matrix(w, p.shape[3])
        acc = acc + params[k] * jnp.einsum('hi,ncij,wj->nchw', uh, s, uw)
    y = jnp.einsum('dc,nchw->ndhw', w2_eff, acc) + b2_eff[None, :, None, None]
    return jnp.maximum(y, 0.0).astype(x.dtype)


if __name__ == "__main__":
    key = jax.random.PRNGKey(0)
    N, c_in, c_out = 2, 4, 8
    HL = WL = 24          # x_L spatial (>= 8 so pool5 kernel [6,8] is valid)
    h = w = 24            # target spatial of x
    ks = jax.random.split(key, 12)

    x_L = jax.random.normal(ks[0], (N, c_in, HL, WL), jnp.float32)
    x = jax.random.normal(ks[1], (N, c_out, h, w), jnp.float32)

    weights = {
        "params":    jnp.ones((4,), jnp.float32),                 # nn.Parameter(torch.ones(4))
        # 1x1 conv weights stored as (Cout, Cin); a real PyTorch state dict
        # would be (Cout, Cin, 1, 1) -> squeeze the trailing dims.
        "conv1_w":   0.1 * jax.random.normal(ks[2], (c_out, c_in), jnp.float32),
        "bn1_gamma": 1.0 + 0.05 * jax.random.normal(ks[3], (c_in,), jnp.float32),
        "bn1_beta":  0.05 * jax.random.normal(ks[4], (c_in,), jnp.float32),
        "bn1_mean":  0.1 * jax.random.normal(ks[5], (c_in,), jnp.float32),
        "bn1_var":   jax.random.uniform(ks[6], (c_in,), jnp.float32, 0.5, 1.5),
        "conv2_w":   0.1 * jax.random.normal(ks[7], (c_out, c_out), jnp.float32),
        "bn2_gamma": 1.0 + 0.05 * jax.random.normal(ks[8], (c_out,), jnp.float32),
        "bn2_beta":  0.05 * jax.random.normal(ks[9], (c_out,), jnp.float32),
        "bn2_mean":  0.1 * jax.random.normal(ks[10], (c_out,), jnp.float32),
        "bn2_var":   jax.random.uniform(ks[11], (c_out,), jnp.float32, 0.5, 1.5),
    }

    fwd = jax.jit(spp_block_forward)
    out = fwd(x_L, x, weights)
    jax.block_until_ready(out)

    assert out.shape == (N, c_out, h, w)
    assert bool(jnp.all(jnp.isfinite(out)))
    ref = _reference(x_L, x, weights)
    assert bool(jnp.allclose(out, ref, rtol=5e-2, atol=5e-2)), \
        "max abs diff vs reference: %g" % float(jnp.max(jnp.abs(out - ref)))
    print("KERNEL_OK")
</pallas_src>

<mosaic_0001>
module attributes {stable_mosaic.version = 11 : i64} {
  func.func private @main(%arg0: i32) attributes {dimension_semantics = [#tpu.dimension_semantics<core_parallel>], iteration_bounds = array<i64: 2>, tpu.core_type = #tpu.core_type<sc_scalar_subcore>, window_params = []} {
    return
  }
}

module attributes {stable_mosaic.version = 11 : i64} {
  func.func private @main(%arg0: i32) attributes {dimension_semantics = [#tpu.dimension_semantics<core_parallel>], iteration_bounds = array<i64: 2>, tpu.core_type = #tpu.core_type<sc_scalar_subcore>, window_params = []} {
    return
  }
}

module attributes {stable_mosaic.version = 11 : i64} {
  func.func @_spp_kernel(%arg0: i32, %arg1: memref<1x8x576xf32, #tpu.memory_space<vmem>>, %arg2: memref<1x8x205xf32, #tpu.memory_space<vmem>>, %arg3: memref<205x576xf32, #tpu.memory_space<vmem>>, %arg4: memref<8x8xf32, #tpu.memory_space<vmem>>, %arg5: memref<8x1xf32, #tpu.memory_space<vmem>>, %arg6: memref<1x8x576xf32, #tpu.memory_space<vmem>>) attributes {dimension_semantics = [#tpu.dimension_semantics<parallel>], iteration_bounds = array<i64: 2>, scalar_prefetch = 0 : i64, scratch_operands = 0 : i64, tpu.core_type = #tpu.core_type<tc>, window_params = [{transform_indices = @transform_0, window_bounds = array<i64: 1, 8, 576>}, {transform_indices = @transform_1, window_bounds = array<i64: 1, 8, 205>}, {pipeline_mode = #tpu.pipeline_mode<synchronous>, transform_indices = @transform_2, window_bounds = array<i64: 205, 576>}, {pipeline_mode = #tpu.pipeline_mode<synchronous>, transform_indices = @transform_3, window_bounds = array<i64: 8, 8>}, {pipeline_mode = #tpu.pipeline_mode<synchronous>, transform_indices = @transform_4, window_bounds = array<i64: 8, 1>}, {transform_indices = @transform_5, window_bounds = array<i64: 1, 8, 576>}]} {
    %c0 = arith.constant 0 : index
    %c0_0 = arith.constant 0 : index
    %c0_1 = arith.constant 0 : index
    %0 = vector.load %arg2[%c0, %c0_0, %c0_1] : memref<1x8x205xf32, #tpu.memory_space<vmem>>, vector<1x8x205xf32>
    %1 = vector.shape_cast %0 : vector<1x8x205xf32> to vector<8x205xf32>
    %c0_2 = arith.constant 0 : index
    %c0_3 = arith.constant 0 : index
    %2 = vector.load %arg3[%c0_2, %c0_3] : memref<205x576xf32, #tpu.memory_space<vmem>>, vector<205x576xf32>
    %cst = arith.constant dense<0.000000e+00> : vector<8x576xf32>
    %3 = tpu.matmul %1, %2, %cst {dimension_numbers = #tpu.dot_dimension_numbers<[1], [0], [0], [1], [0, 0, 1, 1], [], []>} : vector<8x205xf32>, vector<205x576xf32>, vector<8x576xf32> -> vector<8x576xf32>
    %c0_4 = arith.constant 0 : index
    %c0_5 = arith.constant 0 : index
    %c0_6 = arith.constant 0 : index
    %4 = vector.load %arg1[%c0_4, %c0_5, %c0_6] : memref<1x8x576xf32, #tpu.memory_space<vmem>>, vector<1x8x576xf32>
    %5 = vector.shape_cast %4 : vector<1x8x576xf32> to vector<8x576xf32>
    %6 = arith.addf %5, %3 : vector<8x576xf32>
    %c0_7 = arith.constant 0 : index
    %c0_8 = arith.constant 0 : index
    %7 = vector.load %arg4[%c0_7, %c0_8] : memref<8x8xf32, #tpu.memory_space<vmem>>, vector<8x8xf32>
    %cst_9 = arith.constant dense<0.000000e+00> : vector<8x576xf32>
    %8 = tpu.matmul %7, %6, %cst_9 {dimension_numbers = #tpu.dot_dimension_numbers<[1], [0], [0], [1], [0, 0, 1, 1], [], []>} : vector<8x8xf32>, vector<8x576xf32>, vector<8x576xf32> -> vector<8x576xf32>
    %c0_10 = arith.constant 0 : index
    %c0_11 = arith.constant 0 : index
    %9 = vector.load %arg5[%c0_10, %c0_11] : memref<8x1xf32, #tpu.memory_space<vmem>>, vector<8x1xf32>
    %10 = vector.broadcast %9 : vector<8x1xf32> to vector<8x576xf32>
    %11 = arith.addf %8, %10 : vector<8x576xf32>
    %cst_12 = arith.constant 0.000000e+00 : f32
    %12 = vector.broadcast %cst_12 : f32 to vector<8x576xf32>
    %13 = arith.maximumf %11, %12 : vector<8x576xf32>
    %c0_13 = arith.constant 0 : index
    %c0_14 = arith.constant 0 : index
    %c0_15 = arith.constant 0 : index
    %14 = vector.load %arg6[%c0_13, %c0_14, %c0_15] : memref<1x8x576xf32, #tpu.memory_space<vmem>>, vector<1x8x576xf32>
    %15 = vector.shape_cast %14 : vector<1x8x576xf32> to vector<8x576xf32>
    %16 = vector.shape_cast %13 : vector<8x576xf32> to vector<1x8x576xf32>
    tpu.vector_store %arg6[%c0_13, %c0_14, %c0_15], %16 {strides = array<i32>} : memref<1x8x576xf32, #tpu.memory_space<vmem>>, vector<1x8x576xf32>,
    return
  }
  func.func @transform_0(%arg0: i32) -> (i32, i32, i32) {
    %c0_i32 = arith.constant 0 : i32
    %c0_i32_0 = arith.constant 0 : i32
    %c0_i32_1 = arith.constant 0 : i32
    return %arg0, %c0_i32, %c0_i32_0 : i32, i32, i32
  }
  func.func @transform_1(%arg0: i32) -> (i32, i32, i32) {
    %c0_i32 = arith.constant 0 : i32
    %c0_i32_0 = arith.constant 0 : i32
    %c0_i32_1 = arith.constant 0 : i32
    return %arg0, %c0_i32, %c0_i32_0 : i32, i32, i32
  }
  func.func @transform_2(%arg0: i32) -> (i32, i32) {
    %c0_i32 = arith.constant 0 : i32
    %c0_i32_0 = arith.constant 0 : i32
    %c0_i32_1 = arith.constant 0 : i32
    return %c0_i32, %c0_i32_0 : i32, i32
  }
  func.func @transform_3(%arg0: i32) -> (i32, i32) {
    %c0_i32 = arith.constant 0 : i32
    %c0_i32_0 = arith.constant 0 : i32
    %c0_i32_1 = arith.constant 0 : i32
    return %c0_i32, %c0_i32_0 : i32, i32
  }
  func.func @transform_4(%arg0: i32) -> (i32, i32) {
    %c0_i32 = arith.constant 0 : i32
    %c0_i32_0 = arith.constant 0 : i32
    %c0_i32_1 = arith.constant 0 : i32
    return %c0_i32, %c0_i32_0 : i32, i32
  }
  func.func @transform_5(%arg0: i32) -> (i32, i32, i32) {
    %c0_i32 = arith.constant 0 : i32
    %c0_i32_0 = arith.constant 0 : i32
    %c0_i32_1 = arith.constant 0 : i32
    return %arg0, %c0_i32, %c0_i32_0 : i32, i32, i32
  }
}

</mosaic_0001>

<bundles_post_ra>
// kernel: spp_block_forward.1
= control target key start
LH: loop header
LB: loop body
LE: loop exit
PB: predicated region body
PF: predicated region fallthrough
CT: control target
= control target key end

     0   :  { %s1004_s18 = smov 0   ;;  %s1487_s0 = inlined_call_operand.vmem [shape: f32[2,8,576], index: 0, kind: input, shape index: {}]   ;;  %s1488_s1 = inlined_call_operand.vmem [shape: f32[2,8,205], index: 1, kind: input, shape index: {}]   ;;  %s1489_s2 = inlined_call_operand.vmem [shape: f32[205,576], index: 2, kind: input, shape index: {}]   ;;  %s1490_s3 = inlined_call_operand.vmem [shape: f32[8,8], index: 3, kind: input, shape index: {}]   ;;  %s1491_s4 = inlined_call_operand.vmem [shape: f32[8,1], index: 4, kind: input, shape index: {}]   ;;  %s1492_s5 = inlined_call_operand.vmem [shape: f32[2,8,576], index: 5, kind: output, shape index: {}]  }
   0x1 LB: > { %s920_s19 = sadd.s32 4294967295, %s969_s18   ;;  %p924_p0 = scmp.ge.s32.totalorder %s969_s18, 1  ;;  %s969_s18 = sphi %s1004_s18, %s15_s18  }
   0x2   : > { %p197_p1 = scmp.lt.s32.totalorder %s969_s18, 3 }
   0x4   : > { %p198_p2 = pnand %p924_p0, %p197_p1 }
   0x5   : > { %p230_p3 = scmp.lt.s32.totalorder (!%p198_p2), %s920_s19, 1 }
   0x6   : > { %201 = sbr.rel (%p198_p2) target bundleno = 510 (0x1fe), region = 40 }
   0xb   : > { %v323_v0 = vld [vmem:[%s1489_s2 + $0x260] sm:$0xff]  ;;  %v322_v1 = vld [vmem:[%s1489_s2 + $0x258] sm:$0xff]  ;;  %v317_v3 = vld [vmem:[%s1489_s2 + $0x230] sm:$0xff]  ;;  %s1494_s19 = smov (!%p230_p3, %s920_s19), 1  ;;  %vm377_vm0 = vcmask 629760   ;;  %vm381_vm1 = vcmask 1044480  }
   0xc   : > { %v318_v2 = vld [vmem:[%s1489_s2 + $0x238] sm:$0xff]  ;;  %397 = vmatprep.subr.mxu0 %v323_v0  ;;  %v313_v4 = vld [vmem:[%s1489_s2 + $0x210] sm:$0xff]  ;;  %v312_v5 = vld [vmem:[%s1489_s2 + $0x208] sm:$0xff]  ;;  %s942_s14 = sshll.u32 %s1494_s19, 4  ;;  %s950_s13 = smul.u32 40, %s1494_s19  ;;  %vm626_vm2 = vcmask 64512  }
   0xd   : > { %398 = vmatpush1.msra.mxu0 %v322_v1  ;;  %v308_v6 = vld [vmem:[%s1489_s2 + $0x1e8] sm:$0xff]  ;;  %v307_v7 = vld [vmem:[%s1489_s2 + $0x1e0] sm:$0xff]  ;;  %v302_v9 = vld [vmem:[%s1489_s2 + $0x1b8] sm:$0xff]  ;;  %s1106_s8 = scalar_lea.vmem %s1488_s1, %s942_s14  ;;  %vm973_vm3 = vmmov 0   ;;  %vm851_vm4 = vcmask 523264  }
   0xe   : > { %399 = vmatprep.subr.mxu0 %v318_v2  ;;  %v303_v8 = vld [vmem:[%s1489_s2 + $0x1c0] sm:$0xff]  ;;  %v298_v10 = vld [vmem:[%s1489_s2 + $0x198] sm:$0xff]  ;;  %v297_v11 = vld [vmem:[%s1489_s2 + $0x190] sm:$0xff]  ;;  %s234_s14 = scalar_lea.vmem %s1487_s0, %s950_s13  ;;  %s244_s23 = scalar_lea.vmem %s1492_s5, %s950_s13 }
   0xf   : > { %400 = vmatpush1.msra.mxu0 %v317_v3  ;;  %v293_v12 = vld [vmem:[%s1489_s2 + $0x170] sm:$0xff]  ;;  %v292_v13 = vld [vmem:[%s1489_s2 + $0x168] sm:$0xff]  ;;  %v287_v15 = vld [vmem:[%s1489_s2 + $0x140] sm:$0xff] }
  0x10   : > { %401 = vmatprep.subr.mxu0 %v313_v4  ;;  %v288_v14 = vld [vmem:[%s1489_s2 + $0x148] sm:$0xff]  ;;  %v283_v16 = vld [vmem:[%s1489_s2 + $0x120] sm:$0xff]  ;;  %v325_v17 = vld [vmem:[%s1489_s2 + $0x270] sm:$0xff] }
  0x11   : > { %402 = vmatpush1.msra.mxu0 %v312_v5  ;;  %v282_v18 = vld [vmem:[%s1489_s2 + $0x118] sm:$0xff]  ;;  %468 = vmatprep.subr.mxu1 %v325_v17  ;;  %v324_v19 = vld [vmem:[%s1489_s2 + $0x268] sm:$0xff]  ;;  %v319_v22 = vld [vmem:[%s1489_s2 + $0x240] sm:$0xff] }
  0x12   : > { %403 = vmatprep.subr.mxu0 %v308_v6  ;;  %v320_v20 = vld [vmem:[%s1489_s2 + $0x248] sm:$0xff]  ;;  %v278_v21 = vld [vmem:[%s1489_s2 + $0xf8] sm:$0xff]  ;;  %469 = vmatpush1.msra.mxu1 %v324_v19  ;;  %v277_v23 = vld [vmem:[%s1489_s2 + $0xf0] sm:$0xff] }
  0x13   : > { %404 = vmatpush1.msra.mxu0 %v307_v7  ;;  %470 = vmatprep.subr.mxu1 %v320_v20  ;;  %v315_v24 = vld [vmem:[%s1489_s2 + $0x220] sm:$0xff]  ;;  %v314_v25 = vld [vmem:[%s1489_s2 + $0x218] sm:$0xff]  ;;  %v273_v26 = vld [vmem:[%s1489_s2 + $0xd0] sm:$0xff] }
  0x14   : > { %405 = vmatprep.subr.mxu0 %v303_v8  ;;  %471 = vmatpush1.msra.mxu1 %v319_v22  ;;  %v310_v27 = vld [vmem:[%s1489_s2 + $0x1f8] sm:$0xff]  ;;  %v272_v28 = vld [vmem:[%s1489_s2 + $0xc8] sm:$0xff]  ;;  %v309_v29 = vld [vmem:[%s1489_s2 + $0x1f0] sm:$0xff] }
  0x15   : > { %406 = vmatpush1.msra.mxu0 %v302_v9  ;;  %472 = vmatprep.subr.mxu1 %v315_v24  ;;  %v268_v30 = vld [vmem:[%s1489_s2 + $0xa8] sm:$0xff]  ;;  %v305_v31 = vld [vmem:[%s1489_s2 + $0x1d0] sm:$0xff]  ;;  %v267_v32 = vld [vmem:[%s1489_s2 + $0xa0] sm:$0xff] }
  0x16   : > { %407 = vmatprep.subr.mxu0 %v298_v10  ;;  %473 = vmatpush1.msra.mxu1 %v314_v25  ;;  %v1124_v33 = vld [vmem:[%s1106_s8 + $0x8] sm:$0xff]  ;;  %v263_v34 = vld [vmem:[%s1489_s2 + $0x80] sm:$0xff]  ;;  %v262_v36 = vld [vmem:[%s1489_s2 + $0x78] sm:$0xff] }
  0x17   : > { %408 = vmatpush1.msra.mxu0 %v297_v11  ;;  %474 = vmatprep.subr.mxu1 %v310_v27  ;;  %v304_v35 = vld [vmem:[%s1489_s2 + $0x1c8] sm:$0xff]  ;;  %v258_v38 = vld [vmem:[%s1489_s2 + $0x58] sm:$0xff]  ;;  %v299_v39 = vld [vmem:[%s1489_s2 + $0x1a0] sm:$0xff] }
  0x18   : > { %409 = vmatprep.subr.mxu0 %v293_v12  ;;  %475 = vmatpush1.msra.mxu1 %v309_v29  ;;  %v300_v37 = vld [vmem:[%s1489_s2 + $0x1a8] sm:$0xff]  ;;  %v257_v40 = vld [vmem:[%s1489_s2 + $0x50] sm:$0xff]  ;;  %v295_v41 = vld [vmem:[%s1489_s2 + $0x180] sm:$0xff] }
  0x19   : > { %410 = vmatpush1.msra.mxu0 %v292_v13  ;;  %476 = vmatprep.subr.mxu1 %v305_v31  ;;  %v253_v42 = vld [vmem:[%s1489_s2 + $0x30] sm:$0xff]  ;;  %v294_v43 = vld [vmem:[%s1489_s2 + $0x178] sm:$0xff]  ;;  %v252_v44 = vld [vmem:[%s1489_s2 + $0x28] sm:$0xff] }
  0x1a   : > { %411 = vmatprep.subr.mxu0 %v288_v14  ;;  %931 = vmatprep.mubr.msk.f32.mxu0 %vm377_vm0, %v1124_v33  ;;  %v290_v45 = vld [vmem:[%s1489_s2 + $0x158] sm:$0xff]  ;;  %v248_v46 = vld [vmem:[%s1489_s2 + $0x8] sm:$0xff]  ;;  %v289_v47 = vld [vmem:[%s1489_s2 + $0x150] sm:$0xff] }
  0x1b   : > { %412 = vmatpush1.msra.mxu0 %v287_v15  ;;  %477 = vmatpush1.msra.mxu1 %v304_v35  ;;  %v247_v48 = vld [vmem:[%s1489_s2] sm:$0xff]  ;;  %v285_v49 = vld [vmem:[%s1489_s2 + $0x130] sm:$0xff]  ;;  %v284_v51 = vld [vmem:[%s1489_s2 + $0x128] sm:$0xff] }
  0x1c   : > { %413 = vmatprep.subr.mxu0 %v283_v16  ;;  %478 = vmatprep.subr.mxu1 %v300_v37  ;;  %v373_v50 = vld [vmem:[%s1489_s2 + $0x3f0] sm:$0x1f]  ;;  %v372_v52 = vld [vmem:[%s1489_s2 + $0x3e8] sm:$0x1f]  ;;  %v279_v55 = vld [vmem:[%s1489_s2 + $0x100] sm:$0xff] }
  0x1d   : > { %414 = vmatpush1.msra.mxu0 %v282_v18  ;;  %479 = vmatpush1.msra.mxu1 %v299_v39  ;;  %v280_v53 = vld [vmem:[%s1489_s2 + $0x108] sm:$0xff]  ;;  %v367_v56 = vld [vmem:[%s1489_s2 + $0x3c0] sm:$0xff]  ;;  %v274_v59 = vld [vmem:[%s1489_s2 + $0xd8] sm:$0xff] }
  0x1e   : > { %415 = vmatprep.subr.mxu0 %v278_v21  ;;  %480 = vmatprep.subr.mxu1 %v295_v41  ;;  %v368_v54 = vld [vmem:[%s1489_s2 + $0x3c8] sm:$0xff]  ;;  %v275_v57 = vld [vmem:[%s1489_s2 + $0xe0] sm:$0xff]  ;;  %v362_v60 = vld [vmem:[%s1489_s2 + $0x398] sm:$0xff] }
  0x1f   : > { %416 = vmatpush1.msra.mxu0 %v277_v23  ;;  %481 = vmatpush1.msra.mxu1 %v294_v43  ;;  %v363_v58 = vld [vmem:[%s1489_s2 + $0x3a0] sm:$0xff]  ;;  %v270_v61 = vld [vmem:[%s1489_s2 + $0xb8] sm:$0xff]  ;;  %v269_v63 = vld [vmem:[%s1489_s2 + $0xb0] sm:$0xff] }
  0x20   : > { %417 = vmatprep.subr.mxu0 %v273_v26  ;;  %482 = vmatprep.subr.mxu1 %v290_v45  ;;  %v358_v62 = vld [vmem:[%s1489_s2 + $0x378] sm:$0xff]  ;;  %v357_v0 = vld [vmem:[%s1489_s2 + $0x370] sm:$0xff]  ;;  %v264_v3 = vld [vmem:[%s1489_s2 + $0x88] sm:$0xff] }
  0x21   : > { %418 = vmatpush1.msra.mxu0 %v272_v28  ;;  %483 = vmatpush1.msra.mxu1 %v289_v47  ;;  %v265_v1 = vld [vmem:[%s1489_s2 + $0x90] sm:$0xff]  ;;  %v352_v4 = vld [vmem:[%s1489_s2 + $0x348] sm:$0xff]  ;;  %v259_v7 = vld [vmem:[%s1489_s2 + $0x60] sm:$0xff] }
  0x22   : > { %419 = vmatprep.subr.mxu0 %v268_v30  ;;  %484 = vmatprep.subr.mxu1 %v285_v49  ;;  %v353_v2 = vld [vmem:[%s1489_s2 + $0x350] sm:$0xff]  ;;  %v260_v5 = vld [vmem:[%s1489_s2 + $0x68] sm:$0xff]  ;;  %v347_v8 = vld [vmem:[%s1489_s2 + $0x320] sm:$0xff]  ;;  %v971_v30 = vmov 0.0  }
  0x23   : > { %420 = vmatpush1.msra.mxu0 %v267_v32  ;;  %485 = vmatpush1.msra.mxu1 %v284_v51  ;;  %v348_v6 = vld [vmem:[%s1489_s2 + $0x328] sm:$0xff]  ;;  %v255_v9 = vld [vmem:[%s1489_s2 + $0x40] sm:$0xff]  ;;  %v254_v11 = vld [vmem:[%s1489_s2 + $0x38] sm:$0xff] }
  0x24   : > { %421 = vmatprep.subr.mxu0 %v263_v34  ;;  %486 = vmatprep.subr.mxu1 %v280_v53  ;;  %v343_v10 = vld [vmem:[%s1489_s2 + $0x300] sm:$0xff]  ;;  %v342_v12 = vld [vmem:[%s1489_s2 + $0x2f8] sm:$0xff]  ;;  %v249_v15 = vld [vmem:[%s1489_s2 + $0x10] sm:$0xff] }
  0x25   : > { %422 = vmatpush1.msra.mxu0 %v262_v36  ;;  %487 = vmatpush1.msra.mxu1 %v279_v55  ;;  %v250_v13 = vld [vmem:[%s1489_s2 + $0x18] sm:$0xff]  ;;  %v337_v16 = vld [vmem:[%s1489_s2 + $0x2d0] sm:$0xff]  ;;  %v375_v17 = vld [vmem:[%s1489_s2 + $0x400] sm:$0x1f] }
  0x26   : > { %423 = vmatprep.subr.mxu0 %v258_v38  ;;  %488 = vmatprep.subr.mxu1 %v275_v57  ;;  %v338_v14 = vld [vmem:[%s1489_s2 + $0x2d8] sm:$0xff]  ;;  %v333_v18 = vld [vmem:[%s1489_s2 + $0x2b0] sm:$0xff]  ;;  %v332_v20 = vld [vmem:[%s1489_s2 + $0x2a8] sm:$0xff] }
  0x27   : > { %424 = vmatpush1.msra.mxu0 %v257_v40  ;;  %489 = vmatpush1.msra.mxu1 %v274_v59  ;;  %v374_v19 = vld [vmem:[%s1489_s2 + $0x3f8] sm:$0x1f]  ;;  %v328_v22 = vld [vmem:[%s1489_s2 + $0x288] sm:$0xff]  ;;  %v369_v23 = vld [vmem:[%s1489_s2 + $0x3d0] sm:$0xff] }
  0x28   : > { %425 = vmatprep.subr.mxu0 %v253_v42  ;;  %490 = vmatprep.subr.mxu1 %v270_v61  ;;  %v370_v21 = vld [vmem:[%s1489_s2 + $0x3d8] sm:$0xff]  ;;  %v327_v24 = vld [vmem:[%s1489_s2 + $0x280] sm:$0xff]  ;;  %v365_v25 = vld [vmem:[%s1489_s2 + $0x3b0] sm:$0xff] }
  0x29   : > { %426 = vmatpush1.msra.mxu0 %v252_v44  ;;  %491 = vmatpush1.msra.mxu1 %v269_v63  ;;  %v1301_v26 = vld [vmem:[%s1106_s8] sm:$0xff]  ;;  %v326_v27 = vld [vmem:[%s1489_s2 + $0x278] sm:$0xff]  ;;  %v364_v28 = vld [vmem:[%s1489_s2 + $0x3a8] sm:$0xff] }
  0x2a   : > { %427 = vmatprep.subr.mxu0 %v248_v46  ;;  %492 = vmatprep.subr.mxu1 %v265_v1  ;;  %v360_v29 = vld [vmem:[%s1489_s2 + $0x388] sm:$0xff]  ;;  %v321_v31 = vld [vmem:[%s1489_s2 + $0x250] sm:$0xff]  ;;  %v359_v32 = vld [vmem:[%s1489_s2 + $0x380] sm:$0xff] }
  0x2b   : > { %428 = vmatpush1.msra.mxu0 %v247_v48  ;;  %493 = vmatpush1.msra.mxu1 %v264_v3  ;;  %v355_v34 = vld [vmem:[%s1489_s2 + $0x360] sm:$0xff]  ;;  %v316_v35 = vld [vmem:[%s1489_s2 + $0x228] sm:$0xff]  ;;  %v354_v36 = vld [vmem:[%s1489_s2 + $0x358] sm:$0xff] }
  0x2c   : > { %929 = vmatprep.subr.msk.mxu0 %vm381_vm1, %v373_v50  ;;  %494 = vmatprep.subr.mxu1 %v260_v5  ;;  %v350_v37 = vld [vmem:[%s1489_s2 + $0x338] sm:$0xff]  ;;  %v311_v38 = vld [vmem:[%s1489_s2 + $0x200] sm:$0xff]  ;;  %v349_v39 = vld [vmem:[%s1489_s2 + $0x330] sm:$0xff] }
  0x2d   : > { %930 = vmatpush2.msk.msra.mxu0 %vm381_vm1, %v372_v52  ;;  %495 = vmatpush1.msra.mxu1 %v259_v7  ;;  %v345_v40 = vld [vmem:[%s1489_s2 + $0x310] sm:$0xff]  ;;  %v306_v41 = vld [vmem:[%s1489_s2 + $0x1d8] sm:$0xff]  ;;  %v344_v42 = vld [vmem:[%s1489_s2 + $0x308] sm:$0xff] }
  0x2e   : > { %443 = vmatprep.subr.mxu0 %v368_v54  ;;  %496 = vmatprep.subr.mxu1 %v255_v9  ;;  %v340_v43 = vld [vmem:[%s1489_s2 + $0x2e8] sm:$0xff]  ;;  %v301_v44 = vld [vmem:[%s1489_s2 + $0x1b0] sm:$0xff]  ;;  %v339_v45 = vld [vmem:[%s1489_s2 + $0x2e0] sm:$0xff] }
  0x2f   : > { %444 = vmatpush2.msra.mxu0 %v367_v56  ;;  %497 = vmatpush1.msra.mxu1 %v254_v11  ;;  %v335_v46 = vld [vmem:[%s1489_s2 + $0x2c0] sm:$0xff]  ;;  %v296_v47 = vld [vmem:[%s1489_s2 + $0x188] sm:$0xff]  ;;  %v334_v48 = vld [vmem:[%s1489_s2 + $0x2b8] sm:$0xff] }
  0x30   : > { %445 = vmatprep.subr.mxu0 %v363_v58  ;;  %498 = vmatprep.subr.mxu1 %v250_v13  ;;  %v330_v49 = vld [vmem:[%s1489_s2 + $0x298] sm:$0xff]  ;;  %v291_v50 = vld [vmem:[%s1489_s2 + $0x160] sm:$0xff]  ;;  %v329_v51 = vld [vmem:[%s1489_s2 + $0x290] sm:$0xff] }
  0x31   : > { %446 = vmatpush2.msra.mxu0 %v362_v60  ;;  %499 = vmatpush1.msra.mxu1 %v249_v15  ;;  %v286_v52 = vld [vmem:[%s1489_s2 + $0x138] sm:$0xff]  ;;  %v281_v53 = vld [vmem:[%s1489_s2 + $0x110] sm:$0xff]  ;;  %v276_v54 = vld [vmem:[%s1489_s2 + $0xe8] sm:$0xff] }
  0x32   : > { %447 = vmatprep.subr.mxu0 %v358_v62  ;;  %932 = vmatprep.subr.msk.mxu1 %vm381_vm1, %v375_v17  ;;  %v271_v55 = vld [vmem:[%s1489_s2 + $0xc0] sm:$0xff]  ;;  %v266_v56 = vld [vmem:[%s1489_s2 + $0x98] sm:$0xff]  ;;  %v256_v57 = vld [vmem:[%s1489_s2 + $0x48] sm:$0xff] }
  0x33   : > { %448 = vmatpush2.msra.mxu0 %v357_v0  ;;  %933 = vmatpush2.msk.msra.mxu1 %vm381_vm1, %v374_v19  ;;  %v251_v58 = vld [vmem:[%s1489_s2 + $0x20] sm:$0xff]  ;;  %v376_v59 = vld [vmem:[%s1489_s2 + $0x408] sm:$0x1f]  ;;  %v366_v61 = vld [vmem:[%s1489_s2 + $0x3b8] sm:$0xff] }
  0x34   : > { %449 = vmatprep.subr.mxu0 %v353_v2  ;;  %514 = vmatprep.subr.mxu1 %v370_v21  ;;  %v371_v60 = vld [vmem:[%s1489_s2 + $0x3e0] sm:$0xff]  ;;  %v361_v62 = vld [vmem:[%s1489_s2 + $0x390] sm:$0xff]  ;;  %v356_v63 = vld [vmem:[%s1489_s2 + $0x368] sm:$0xff] }
  0x35   : > { %450 = vmatpush2.msra.mxu0 %v352_v4  ;;  %515 = vmatpush2.msra.mxu1 %v369_v23  ;;  %v351_v0 = vld [vmem:[%s1489_s2 + $0x340] sm:$0xff]  ;;  %v346_v1 = vld [vmem:[%s1489_s2 + $0x318] sm:$0xff]  ;;  %v341_v2 = vld [vmem:[%s1489_s2 + $0x2f0] sm:$0xff] }
  0x36   : > { %451 = vmatprep.subr.mxu0 %v348_v6  ;;  %516 = vmatprep.subr.mxu1 %v365_v25  ;;  %v336_v3 = vld [vmem:[%s1489_s2 + $0x2c8] sm:$0xff]  ;;  %v331_v4 = vld [vmem:[%s1489_s2 + $0x2a0] sm:$0xff]  ;;  %v972_v6 = vmov 0  }
  0x37   : > { %452 = vmatpush2.msra.mxu0 %v347_v8  ;;  %517 = vmatpush2.msra.mxu1 %v364_v28  ;;  %v620_v5 = vld [vmem:[%s1491_s4] sm:$0xff]  ;;  %v610_v8 = vld [vmem:[%s234_s14 + $0x8] sm:$0xff] }
  0x38   : > { %453 = vmatprep.subr.mxu0 %v343_v10  ;;  %518 = vmatprep.subr.mxu1 %v360_v29  ;;  %v609_v9 = vld [vmem:[%s234_s14] sm:$0xff] }
  0x39   : > { %454 = vmatpush2.msra.mxu0 %v342_v12  ;;  %519 = vmatpush2.msra.mxu1 %v359_v32  ;;  %v619_v13 = vld [vmem:[%s1490_s3] sm:$0xff] }
  0x3a   : > { %455 = vmatprep.subr.mxu0 %v338_v14  ;;  %520 = vmatprep.subr.mxu1 %v355_v34  ;;  %v611_v14 = vld [vmem:[%s234_s14 + $0x10] sm:$0xff] }
  0x3b   : > { %456 = vmatpush2.msra.mxu0 %v337_v16  ;;  %521 = vmatpush2.msra.mxu1 %v354_v36  ;;  %v612_v16 = vld [vmem:[%s234_s14 + $0x18] sm:$0xff] }
  0x3c   : > { %457 = vmatprep.subr.mxu0 %v333_v18  ;;  %522 = vmatprep.subr.mxu1 %v350_v37 }
  0x3d   : > { %458 = vmatpush2.msra.mxu0 %v332_v20  ;;  %523 = vmatpush2.msra.mxu1 %v349_v39  ;;  %v613_v20 = vld [vmem:[%s234_s14 + $0x20] sm:$0xff] }
  0x3e   : > { %459 = vmatprep.subr.mxu0 %v328_v22  ;;  %524 = vmatprep.subr.mxu1 %v345_v40 }
  0x3f   : > { %460 = vmatpush2.msra.mxu0 %v327_v24  ;;  %525 = vmatpush2.msra.mxu1 %v344_v42 }
  0x40   : > { %462 = vmatmul.mubr.f32.vlgmr.msra.gmra.mxu0 %v1301_v26  ;;  %539 = vmatprep.subr.mxu0 %v971_v30 }
  0x41   : > { %540 = vmatpush1.msra.mxu0 %v326_v27  ;;  %526 = vmatprep.subr.mxu1 %v340_v43 }
  0x42   : > { %541 = vmatprep.subr.mxu0 %v971_v30  ;;  %527 = vmatpush2.msra.mxu1 %v339_v45 }
  0x43   : > { %542 = vmatpush1.msra.mxu0 %v321_v31  ;;  %528 = vmatprep.subr.mxu1 %v335_v46 }
  0x44   : > { %543 = vmatprep.subr.mxu0 %v971_v30  ;;  %529 = vmatpush2.msra.mxu1 %v334_v48 }
  0x45   : > { %544 = vmatpush1.msra.mxu0 %v316_v35  ;;  %530 = vmatprep.subr.mxu1 %v330_v49 }
  0x46   : > { %545 = vmatprep.subr.mxu0 %v971_v30  ;;  %531 = vmatpush2.msra.mxu1 %v329_v51 }
  0x47   : > { %546 = vmatpush1.msra.mxu0 %v311_v38  ;;  %934 = vmatprep.mubr.msk.f32.mxu1 %vm377_vm0, %v1124_v33 }
  0x48   : > { %547 = vmatprep.subr.mxu0 %v971_v30  ;;  %533 = vmatmul.mubr.f32.vlgmr.msra.gmra.mxu1 %v1301_v26 }
  0x49   : > { %548 = vmatpush1.msra.mxu0 %v306_v41  ;;  %936 = vmatprep.mubr.msk.f32.mxu0 %vm377_vm0, %v1124_v33  ;;  %v261_v33 = vld [vmem:[%s1489_s2 + $0x70] sm:$0xff] }
  0x4a   : > { %549 = vmatprep.subr.mxu0 %v971_v30  ;;  %694 = vmatprep.mubr.f32.mxu1 %v971_v30 }
  0x4b   : > { %550 = vmatpush1.msra.mxu0 %v301_v44  ;;  %962 = vset.pattern.permute.xlu0 %v972_v6 }
  0x4c   : > { %551 = vmatprep.subr.mxu0 %v971_v30  ;;  %623 = vperm.xlu0 %962, %v620_v5  }
  0x4d   : > { %552 = vmatpush1.msra.mxu0 %v296_v47 }
  0x4e   : > { %553 = vmatprep.subr.mxu0 %v971_v30 }
  0x4f   : > { %554 = vmatpush1.msra.mxu0 %v291_v50 }
  0x50   : > { %555 = vmatprep.subr.mxu0 %v971_v30 }
  0x51   : > { %556 = vmatpush1.msra.mxu0 %v286_v52 }
  0x52   : > { %557 = vmatprep.subr.mxu0 %v971_v30 }
  0x53   : > { %558 = vmatpush1.msra.mxu0 %v281_v53 }
  0x54   : > { %559 = vmatprep.subr.mxu0 %v971_v30 }
  0x55   : > { %560 = vmatpush1.msra.mxu0 %v276_v54 }
  0x56   : > { %561 = vmatprep.subr.mxu0 %v971_v30 }
  0x57   : > { %562 = vmatpush1.msra.mxu0 %v271_v55 }
  0x58   : > { %563 = vmatprep.subr.mxu0 %v971_v30 }
  0x59   : > { %564 = vmatpush1.msra.mxu0 %v266_v56 }
  0x5a   : > { %565 = vmatprep.subr.mxu0 %v971_v30 }
  0x5b   : > { %566 = vmatpush1.msra.mxu0 %v261_v33 }
  0x5c   : > { %567 = vmatprep.subr.mxu0 %v971_v30 }
  0x5d   : > { %568 = vmatpush1.msra.mxu0 %v256_v57 }
  0x5e   : > { %569 = vmatprep.subr.mxu0 %v971_v30 }
  0x5f   : > { %570 = vmatpush1.msra.mxu0 %v251_v58 }
  0x60   : > { %583 = vmatprep.subr.mxu0 %v971_v30 }
  0x61   : > { %935 = vmatpush2.msk.msra.mxu0 %vm381_vm1, %v376_v59 }
  0x62   : > { %585 = vmatprep.subr.mxu0 %v971_v30 }
  0x63   : > { %586 = vmatpush2.msra.mxu0 %v371_v60 }
  0x64   : > { %587 = vmatprep.subr.mxu0 %v971_v30 }
  0x65   : > { %588 = vmatpush2.msra.mxu0 %v366_v61 }
  0x66   : > { %589 = vmatprep.subr.mxu0 %v971_v30 }
  0x67   : > { %590 = vmatpush2.msra.mxu0 %v361_v62 }
  0x68   : > { %591 = vmatprep.subr.mxu0 %v971_v30 }
  0x69   : > { %592 = vmatpush2.msra.mxu0 %v356_v63 }
  0x6a   : > { %593 = vmatprep.subr.mxu0 %v971_v30 }
  0x6b   : > { %594 = vmatpush2.msra.mxu0 %v351_v0 }
  0x6c   : > { %595 = vmatprep.subr.mxu0 %v971_v30 }
  0x6d   : > { %596 = vmatpush2.msra.mxu0 %v346_v1 }
  0x6e   : > { %597 = vmatprep.subr.mxu0 %v971_v30 }
  0x6f   : > { %598 = vmatpush2.msra.mxu0 %v341_v2 }
  0x70   : > { %599 = vmatprep.subr.mxu0 %v971_v30 }
  0x71   : > { %600 = vmatpush2.msra.mxu0 %v336_v3 }
  0x72   : > { %601 = vmatprep.subr.mxu0 %v971_v30 }
  0x73   : > { %602 = vmatpush2.msra.mxu0 %v331_v4 }
  0x74   : > { %604 = vmatmul.mubr.f32.vlgmr.msra.gmra.mxu0 %v1301_v26 }
  0xc7   : > { %v624_v24 = vpop.permute.xlu0 %623 }
 0x100   : > { %v463_v7 = vpop.f32.mrf.mxu0 }
 0x101   : > { %v614_v12 = vadd.f32 %v609_v9, %v463_v7 }
 0x102   : > { %v465_v10 = vpop.f32.mrf.mxu0 }
 0x103   : > { %v615_v11 = vadd.f32 %v610_v8, %v465_v10 }
 0x105   : > { %660 = vmatprep.subr.mxu1 %v615_v11 }
 0x106   : > { %661 = vmatpush1.msra.mxu1 %v614_v12 }
 0x107   : > { %937 = vmatmul.mubr.msk.f32.vlgmr.msra.gmra.mxu1 %vm626_vm2, %v619_v13 }
 0x108   : > { %765 = vmatprep.mubr.f32.mxu1 %v971_v30  ;;  %v534_v15 = vpop.f32.mrf.mxu1 }
 0x109   : > { %v616_v17 = vadd.f32 %v611_v14, %v534_v15 }
 0x10a   : > { %v536_v18 = vpop.f32.mrf.mxu1 }
 0x10b   : > { %v617_v19 = vadd.f32 %v612_v16, %v536_v18 }
 0x10d   : > { %731 = vmatprep.subr.mxu1 %v617_v19 }
 0x10e   : > { %732 = vmatpush1.msra.mxu1 %v616_v17 }
 0x10f   : > { %938 = vmatmul.mubr.msk.f32.vlgmr.msra.gmra.mxu1 %vm626_vm2, %v619_v13  ;;  %945 = vmatprep.subr.mxu1 %v971_v30 }
 0x110   : > { %947 = vmatprep.mubr.msk.f32.mxu1 %vm973_vm3, %v971_v30 }
 0x134   : > { %v605_v21 = vpop.f32.mrf.mxu0 }
 0x135   : > { %v618_v22 = vadd.f32 %v613_v20, %v605_v21 }
 0x136   : > { %v607_v23 = vpop.f32.mrf.mxu0 }
 0x137   : > { %946 = vmatpush3.msra.mxu1 %v618_v22 }
 0x138   : > { %948 = vmatmul.mubr.msk.f32.vlgmr.msra.gmra.mxu1 %vm626_vm2, %v619_v13 }
 0x1c7   : > { %v696_v25 = vpop.f32.mrf.mxu1 }
 0x1c8   : > { %v697_v26 = vadd.f32 %v696_v25, %v624_v24 }
 0x1c9   : > { %v698_v27 = vpop.f32.mrf.mxu1 }
 0x1ca   : > { %v842_v28 = vmax.f32 %v697_v26, 0.0  ;;  %v699_v29 = vadd.f32 %v698_v27, %v624_v24 }
 0x1cc   : > { %847 = vst [vmem:[%s244_s23] sm:$0xff] %v842_v28  ;;  %v843_v30 = vmax.f32 %v699_v29, 0.0 }
 0x1ce   : > { %848 = vst [vmem:[%s244_s23 + $0x8] sm:$0xff] %v843_v30 }
 0x1cf   : > { %v767_v31 = vpop.f32.mrf.mxu1 }
 0x1d0   : > { %v768_v32 = vadd.f32 %v767_v31, %v624_v24 }
 0x1d1   : > { %v769_v34 = vpop.f32.mrf.mxu1 }
 0x1d2   : > { %v844_v35 = vmax.f32 %v768_v32, 0.0  ;;  %v770_v36 = vadd.f32 %v769_v34, %v624_v24 }
 0x1d4   : > { %849 = vst [vmem:[%s244_s23 + $0x10] sm:$0xff] %v844_v35  ;;  %v845_v37 = vmax.f32 %v770_v36, 0.0 }
 0x1d6   : > { %850 = vst [vmem:[%s244_s23 + $0x18] sm:$0xff] %v845_v37 }
 0x1f8   : > { %v838_v38 = vpop.f32.mrf.mxu1 }
 0x1f9   : > { %v839_v39 = vadd.f32 %v838_v38, %v624_v24 }
 0x1fa   : > { %v949_v40 = vpop.f32.mrf.mxu1 }
 0x1fb   : > { %v846_v41 = vmax.f32 %v839_v39, 0.0 }
 0x1fd   : > { %852 = vst.msk [vmem:[%s244_s23 + $0x20] sm:$0xff] %vm851_vm4, %v846_v41 }
 0x1fe PF: > { %s15_s18 = sadd.s32 1, %s969_s18  }
 0x1ff   : > { %p12_p4 = scmp.ge.s32.totalorder %s15_s18, 4  }
 0x201   :  { %14 = sbr.rel (!%p12_p4) target bundleno = 1 (0x1), region = 73 }

</bundles_post_ra>
